<compile_context>
chip_gen: v7x
topology: tpu7x:2x2x1
jax: 0.10.0
libtpu: 0.0.40
codegen_flags: <defaults>
</compile_context>

<pallas_src>
import jax
import jax.numpy as jnp
from jax.experimental import pallas as pl
from jax.experimental.pallas import tpu as pltpu


def _round_up(x, m):
    return (x + m - 1) // m * m


def _complex_score_kernel(s_re_ref, s_im_ref, p_re_ref, p_im_ref,
                          o_re_ref, o_im_ref, out_ref):
    s_re = s_re_ref[...]
    s_im = s_im_ref[...]
    p_re = p_re_ref[...]
    p_im = p_im_ref[...]
    o_re = o_re_ref[...]
    o_im = o_im_ref[...]

    # Factored complex-trilinear product (6 muls / element instead of 8):
    #   score = sum(s_re*(p_re*o_re + p_im*o_im) + s_im*(p_re*o_im - p_im*o_re))
    t_re = p_re * o_re + p_im * o_im
    t_im = p_re * o_im - p_im * o_re
    prod = s_re * t_re + s_im * t_im

    block_b = out_ref.shape[-1]
    # Lane reduction, then write as a lane-dense (1, block_b) row so the store
    # is an unmasked full-lane vst (sublane->lane relayout rides the XLU slot).
    out_ref[...] = jnp.sum(prod, axis=1).reshape(1, block_b)


def complex_score_pallas(s_re, s_im, p_re, p_im, o_re, o_im, *,
                         block_b=1024, vmem_limit_bytes=32 * 1024 * 1024):
    """All inputs (B, rank) float32. Returns (B,) float32 scores."""
    B, R = s_re.shape

    # ---- pick the batch tile -------------------------------------------------
    # Budget: 6 inputs x 2 pipeline buffers x block_b x R x 4B must fit in
    # scoped VMEM with headroom on every generation (v7x only has 64 MiB
    # physical; v5e's scoped default is raised via vmem_limit_bytes below).
    input_budget_bytes = 20 * 1024 * 1024
    max_rows = max(128, (input_budget_bytes // (6 * 2 * 4 * R)) // 128 * 128)
    block_b = max(128, (block_b // 128) * 128)   # lane-dense output tiles
    block_b = min(block_b, max_rows)
    if B <= block_b:                             # small batch: single block
        block_b = max(8, _round_up(B, 8))

    num_blocks = pl.cdiv(B, block_b)
    b_pad = num_blocks * block_b

    inputs = (s_re, s_im, p_re, p_im, o_re, o_im)
    if b_pad != B:                               # ragged tail: zero-pad rows
        pad = ((0, b_pad - B), (0, 0))
        inputs = tuple(jnp.pad(x, pad) for x in inputs)

    in_spec = pl.BlockSpec((block_b, R), lambda i: (i, 0))
    out = pl.pallas_call(
        _complex_score_kernel,
        out_shape=jax.ShapeDtypeStruct((1, b_pad), jnp.float32),
        grid_spec=pltpu.PrefetchScalarGridSpec(
            num_scalar_prefetch=0,
            grid=(num_blocks,),
            in_specs=[in_spec] * 6,
            out_specs=pl.BlockSpec((1, block_b), lambda i: (0, i)),
        ),
        compiler_params=pltpu.CompilerParams(
            dimension_semantics=("parallel",),
            vmem_limit_bytes=vmem_limit_bytes,
        ),
    )(*inputs)
    return out[0, :B]


class ComplExPallas:
    """JAX/Pallas port of the PyTorch ComplEx module's forward pass."""

    def __init__(self, size, rank, key):
        n_entities, n_predicates, _ = size
        k_so, k_p = jax.random.split(key, 2)
        self.rank = 2 * rank  # matches the PyTorch module's self.rank convention
        # torch.empty((N, 2*rank)).normal_(0, 0.001); stored pre-split into
        # lane-aligned real / imaginary slabs so the kernel never slices lanes.
        emb_so = 0.001 * jax.random.normal(k_so, (n_entities, 2 * rank), jnp.float32)
        emb_p = 0.001 * jax.random.normal(k_p, (n_predicates, 2 * rank), jnp.float32)
        self.emb_so_re, self.emb_so_im = emb_so[:, :rank], emb_so[:, rank:]
        self.emb_p_re, self.emb_p_im = emb_p[:, :rank], emb_p[:, rank:]

    def forward(self, s_idx, p_idx, o_idx):
        # Glue: embedding gathers stay in XLA.
        # TODO(synk): fuse the gather into the kernel (scalar-prefetched indices
        # + manual DMA rows from HBM tables) to cut the extra HBM round-trip.
        s_re, s_im = self.emb_so_re[s_idx], self.emb_so_im[s_idx]
        p_re, p_im = self.emb_p_re[p_idx], self.emb_p_im[p_idx]
        o_re, o_im = self.emb_so_re[o_idx], self.emb_so_im[o_idx]
        return complex_score_pallas(s_re, s_im, p_re, p_im, o_re, o_im)

    def forward_ref(self, s_idx, p_idx, o_idx):
        """Pure-JAX reference identical to the PyTorch score()."""
        s_re, s_im = self.emb_so_re[s_idx], self.emb_so_im[s_idx]
        p_re, p_im = self.emb_p_re[p_idx], self.emb_p_im[p_idx]
        o_re, o_im = self.emb_so_re[o_idx], self.emb_so_im[o_idx]
        score1 = jnp.sum(p_re * s_re * o_re, axis=1)
        score2 = jnp.sum(p_re * s_im * o_im, axis=1)
        score3 = jnp.sum(p_im * s_re * o_im, axis=1)
        score4 = jnp.sum(p_im * s_im * o_re, axis=1)
        return score1 + score2 + score3 - score4


if __name__ == "__main__":
    key = jax.random.PRNGKey(0)
    k_model, k_s, k_p, k_o = jax.random.split(key, 4)

    n_entities, n_predicates = 64, 16
    rank = 64        # embedding dim 2*rank = 128 (one full lane register)
    batch = 300      # deliberately not a multiple of the tile (exercises padding)

    model = ComplExPallas((n_entities, n_predicates, n_entities), rank, k_model)

    s_idx = jax.random.randint(k_s, (batch,), 0, n_entities)
    p_idx = jax.random.randint(k_p, (batch,), 0, n_predicates)
    o_idx = jax.random.randint(k_o, (batch,), 0, n_entities)

    # Small block_b here just to exercise the multi-block lane-dense output
    # path at a tiny demo size; real workloads use the (large) default.
    s_re, s_im = model.emb_so_re[s_idx], model.emb_so_im[s_idx]
    p_re, p_im = model.emb_p_re[p_idx], model.emb_p_im[p_idx]
    o_re, o_im = model.emb_so_re[o_idx], model.emb_so_im[o_idx]
    out = complex_score_pallas(s_re, s_im, p_re, p_im, o_re, o_im, block_b=128)
    out = jax.block_until_ready(out)

    ref = model.forward_ref(s_idx, p_idx, o_idx)
    assert out.shape == (batch,)
    assert jnp.allclose(out, ref, rtol=1e-5, atol=1e-10), (out, ref)

    # Also exercise the default (auto-budgeted) tile via the module API.
    out2 = jax.block_until_ready(model.forward(s_idx, p_idx, o_idx))
    assert jnp.allclose(out2, ref, rtol=1e-5, atol=1e-10), (out2, ref)

    print("KERNEL_OK")
</pallas_src>

<mosaic_0001>
module attributes {stable_mosaic.version = 11 : i64} {
  func.func @_complex_score_kernel(%arg0: i32, %arg1: memref<128x64xf32, #tpu.memory_space<vmem>>, %arg2: memref<128x64xf32, #tpu.memory_space<vmem>>, %arg3: memref<128x64xf32, #tpu.memory_space<vmem>>, %arg4: memref<128x64xf32, #tpu.memory_space<vmem>>, %arg5: memref<128x64xf32, #tpu.memory_space<vmem>>, %arg6: memref<128x64xf32, #tpu.memory_space<vmem>>, %arg7: memref<1x128xf32, #tpu.memory_space<vmem>>) attributes {dimension_semantics = [#tpu.dimension_semantics<parallel>], iteration_bounds = array<i64: 3>, scalar_prefetch = 0 : i64, scratch_operands = 0 : i64, tpu.core_type = #tpu.core_type<tc>, window_params = [{transform_indices = @transform_0, window_bounds = array<i64: 128, 64>}, {transform_indices = @transform_1, window_bounds = array<i64: 128, 64>}, {transform_indices = @transform_2, window_bounds = array<i64: 128, 64>}, {transform_indices = @transform_3, window_bounds = array<i64: 128, 64>}, {transform_indices = @transform_4, window_bounds = array<i64: 128, 64>}, {transform_indices = @transform_5, window_bounds = array<i64: 128, 64>}, {transform_indices = @transform_6, window_bounds = array<i64: 1, 128>}]} {
    %c0 = arith.constant 0 : index
    %c0_0 = arith.constant 0 : index
    %0 = vector.load %arg1[%c0, %c0_0] : memref<128x64xf32, #tpu.memory_space<vmem>>, vector<128x64xf32>
    %c0_1 = arith.constant 0 : index
    %c0_2 = arith.constant 0 : index
    %1 = vector.load %arg2[%c0_1, %c0_2] : memref<128x64xf32, #tpu.memory_space<vmem>>, vector<128x64xf32>
    %c0_3 = arith.constant 0 : index
    %c0_4 = arith.constant 0 : index
    %2 = vector.load %arg3[%c0_3, %c0_4] : memref<128x64xf32, #tpu.memory_space<vmem>>, vector<128x64xf32>
    %c0_5 = arith.constant 0 : index
    %c0_6 = arith.constant 0 : index
    %3 = vector.load %arg4[%c0_5, %c0_6] : memref<128x64xf32, #tpu.memory_space<vmem>>, vector<128x64xf32>
    %c0_7 = arith.constant 0 : index
    %c0_8 = arith.constant 0 : index
    %4 = vector.load %arg5[%c0_7, %c0_8] : memref<128x64xf32, #tpu.memory_space<vmem>>, vector<128x64xf32>
    %c0_9 = arith.constant 0 : index
    %c0_10 = arith.constant 0 : index
    %5 = vector.load %arg6[%c0_9, %c0_10] : memref<128x64xf32, #tpu.memory_space<vmem>>, vector<128x64xf32>
    %6 = arith.mulf %2, %4 : vector<128x64xf32>
    %7 = arith.mulf %3, %5 : vector<128x64xf32>
    %8 = arith.addf %6, %7 : vector<128x64xf32>
    %9 = arith.mulf %2, %5 : vector<128x64xf32>
    %10 = arith.mulf %3, %4 : vector<128x64xf32>
    %11 = arith.subf %9, %10 : vector<128x64xf32>
    %12 = arith.mulf %0, %8 : vector<128x64xf32>
    %13 = arith.mulf %1, %11 : vector<128x64xf32>
    %14 = arith.addf %12, %13 : vector<128x64xf32>
    %cst = arith.constant dense<0.000000e+00> : vector<128xf32>
    %15 = vector.multi_reduction <add>, %14, %cst [1] : vector<128x64xf32> to vector<128xf32>
    %16 = vector.shape_cast %15 : vector<128xf32> to vector<1x128xf32>
    %c0_11 = arith.constant 0 : index
    %c0_12 = arith.constant 0 : index
    %17 = vector.load %arg7[%c0_11, %c0_12] : memref<1x128xf32, #tpu.memory_space<vmem>>, vector<1x128xf32>
    tpu.vector_store %arg7[%c0_11, %c0_12], %16 {strides = array<i32>} : memref<1x128xf32, #tpu.memory_space<vmem>>, vector<1x128xf32>,
    return
  }
  func.func @transform_0(%arg0: i32) -> (i32, i32) {
    %c0_i32 = arith.constant 0 : i32
    %c0_i32_0 = arith.constant 0 : i32
    return %arg0, %c0_i32 : i32, i32
  }
  func.func @transform_1(%arg0: i32) -> (i32, i32) {
    %c0_i32 = arith.constant 0 : i32
    %c0_i32_0 = arith.constant 0 : i32
    return %arg0, %c0_i32 : i32, i32
  }
  func.func @transform_2(%arg0: i32) -> (i32, i32) {
    %c0_i32 = arith.constant 0 : i32
    %c0_i32_0 = arith.constant 0 : i32
    return %arg0, %c0_i32 : i32, i32
  }
  func.func @transform_3(%arg0: i32) -> (i32, i32) {
    %c0_i32 = arith.constant 0 : i32
    %c0_i32_0 = arith.constant 0 : i32
    return %arg0, %c0_i32 : i32, i32
  }
  func.func @transform_4(%arg0: i32) -> (i32, i32) {
    %c0_i32 = arith.constant 0 : i32
    %c0_i32_0 = arith.constant 0 : i32
    return %arg0, %c0_i32 : i32, i32
  }
  func.func @transform_5(%arg0: i32) -> (i32, i32) {
    %c0_i32 = arith.constant 0 : i32
    %c0_i32_0 = arith.constant 0 : i32
    return %arg0, %c0_i32 : i32, i32
  }
  func.func @transform_6(%arg0: i32) -> (i32, i32) {
    %c0_i32 = arith.constant 0 : i32
    %c0_i32_0 = arith.constant 0 : i32
    return %c0_i32, %arg0 : i32, i32
  }
}

</mosaic_0001>

<bundles_post_ra>
// kernel: tpu_custom_call.1
= control target key start
LH: loop header
LB: loop body
LE: loop exit
PB: predicated region body
PF: predicated region fallthrough
CT: control target
= control target key end

     0   :  { %11 = vsyncpa [#allocation3], 0  ;;  %s1339_s0 = inlined_call_operand.vmem [shape: f32[384,64], index: 0, kind: input, shape index: {}]   ;;  %s1340_s1 = inlined_call_operand.vmem [shape: f32[384,64], index: 1, kind: input, shape index: {}]   ;;  %s1341_s2 = inlined_call_operand.vmem [shape: f32[384,64], index: 2, kind: input, shape index: {}]   ;;  %s1342_s3 = inlined_call_operand.vmem [shape: f32[384,64], index: 3, kind: input, shape index: {}]   ;;  %s1343_s4 = inlined_call_operand.vmem [shape: f32[384,64], index: 4, kind: input, shape index: {}]   ;;  %s1344_s5 = inlined_call_operand.vmem [shape: f32[384,64], index: 5, kind: input, shape index: {}]   ;;  %s1345_s6 = inlined_call_operand.hbm [shape: f32[1,384], index: 6, kind: output, shape index: {}]  }
   0x1   :  { %13 = vsyncpa [#allocation3 + $0x1], 0  ;;  %s1065_s21 = smov 0   ;;  %s1067_s22 = smov 0  }
   0x2   :  { %s1069_s23 = smov 0   ;;  %s1071_s24 = smov 0  }
   0x3 LB: > { %s906_s25 = sadd.s32 4294967295, %s1027_s24   ;;  %s907_s26 = sadd.s32 4294967294, %s1027_s24   ;;  %s1027_s24 = sphi %s1071_s24, %s1351_s24   ;;  %s1023_s23 = sphi %s1069_s23, %s1350_s23   ;;  %s1019_s22 = sphi %s1067_s22, %s1349_s22   ;;  %s1015_s21 = sphi %s1065_s21, %s1348_s21  }
   0x4   : > { %s1088_s27 = sadd.s32 1, %s1027_s24   ;;  %s182_s28 = sadd.s32 1, %s1023_s23 }
   0x5   : > { %s179_s29 = ssub.s32 %s1027_s24, %s1088_s27  ;;  %p192_p0 = scmp.ne.s32.totalorder %s1023_s23, %s1019_s22 }
   0x6   : > { %p180_p1 = scmp.eq.s32.totalorder %s179_s29, 0  ;;  %p193_p2 = scmp.eq.s32.totalorder %s906_s25, 2 }
   0x7   : > { %p198_p3 = scmp.ne.s32.totalorder %s1019_s22, %s1015_s21  ;;  %p199_p4 = scmp.eq.s32.totalorder %s907_s26, 2 }
   0x8   : > { %s1098_s30 = scalar_select %p180_p1, %s1023_s23, %s182_s28  }
   0x9   : > { %p1100_p5 = por %p193_p2, %p192_p0  ;;  %p1104_p6 = por %p199_p4, %p198_p3 }
   0xa   : > { %p910_p7 = scmp.ge.s32.totalorder %s1027_s24, 1  ;;  %p271_p8 = scmp.lt.s32.totalorder %s1027_s24, 4 }
   0xc   : > { %p272_p9 = pnand %p910_p7, %p271_p8 }
   0xd   : > { %s1110_s9 = sshll.u32 (!%p272_p9), %s906_s25, 4  ;;  %vm601_vm0 = vcmask (!%p272_p9), 523264   ;;  %vm677_vm1 = vcmask (!%p272_p9), 130112   ;;  %vm684_vm2 = vcmask (!%p272_p9), 195712   ;;  %vm691_vm3 = vcmask (!%p272_p9), 261312  }
   0xe   : > { %275 = sbr.rel (%p272_p9) target bundleno = 234 (0xea), region = 44  ;;  %p326_p10 = scmp.lt.s32.totalorder (!%p272_p9), %s1110_s9, 47  ;;  %vm698_vm4 = vcmask (!%p272_p9), 326912   ;;  %vm705_vm5 = vcmask (!%p272_p9), 392512   ;;  %vm712_vm6 = vcmask (!%p272_p9), 458112   ;;  %vm719_vm7 = vcmask (!%p272_p9), 523712  }
   0xf   : > { %vm726_vm8 = vcmask (!%p272_p9), 589312   ;;  %vm733_vm9 = vcmask (!%p272_p9), 654912   ;;  %vm740_vm10 = vcmask (!%p272_p9), 720512   ;;  %vm747_vm11 = vcmask (!%p272_p9), 786112  }
  0x10   : > { %vm754_vm12 = vcmask (!%p272_p9), 851712   ;;  %vm761_vm13 = vcmask (!%p272_p9), 917312   ;;  %vm768_vm14 = vcmask (!%p272_p9), 982912   ;;  %vm775_vm15 = vcmask (!%p272_p9), 1048512  }
  0x15   : > { %s327_s10 = scalar_select %p326_p10, %s1110_s9, 47 }
  0x17   : > { %s912_s11 = sshll.u32 %s327_s10, 3 }
  0x18   : > { %s1117_s14 = scalar_lea.vmem %s1339_s0, %s912_s11  ;;  %s1122_s17 = scalar_lea.vmem %s1340_s1, %s912_s11 }
  0x19   : > { %s1127_s20 = scalar_lea.vmem %s1341_s2, %s912_s11  ;;  %s1132_s28 = scalar_lea.vmem %s1342_s3, %s912_s11  ;;  %v361_v2 = vld [vmem:[%s1117_s14] sm:$0xff]  ;;  %v363_v14 = vld [vmem:[%s1117_s14 + $0x10] sm:$0xff]  ;;  %v362_v28 = vld [vmem:[%s1117_s14 + $0x8] sm:$0xff] }
  0x1a   : > { %s1137_s12 = scalar_lea.vmem %s1343_s4, %s912_s11  ;;  %s1142_s16 = scalar_lea.vmem %s1344_s5, %s912_s11  ;;  %v393_v0 = vld [vmem:[%s1127_s20] sm:$0xff]  ;;  %v395_v6 = vld [vmem:[%s1127_s20 + $0x10] sm:$0xff]  ;;  %v394_v20 = vld [vmem:[%s1127_s20 + $0x8] sm:$0xff] }
  0x1b   : > { %v409_v1 = vld [vmem:[%s1132_s28] sm:$0xff]  ;;  %v411_v11 = vld [vmem:[%s1132_s28 + $0x10] sm:$0xff]  ;;  %v410_v23 = vld [vmem:[%s1132_s28 + $0x8] sm:$0xff]  ;;  %s323_s11 = sand.u32 1, %s1019_s22  }
  0x1c   : > { %v377_v3 = vld [vmem:[%s1122_s17] sm:$0xff]  ;;  %v427_v12 = vld [vmem:[%s1137_s12 + $0x10] sm:$0xff]  ;;  %v426_v24 = vld [vmem:[%s1137_s12 + $0x8] sm:$0xff]  ;;  %s780_s25 = scalar_lea.sflag [#allocation3], %s323_s11 }
  0x1d   : > { %v425_v4 = vld [vmem:[%s1137_s12] sm:$0xff]  ;;  %v443_v13 = vld [vmem:[%s1142_s16 + $0x10] sm:$0xff]  ;;  %v459_v16 = vmul.f32 %v427_v12, %v395_v6  ;;  %v523_v19 = vmul.f32 %v427_v12, %v411_v11  ;;  %v442_v25 = vld [vmem:[%s1142_s16 + $0x8] sm:$0xff]  ;;  %v458_v29 = vmul.f32 %v426_v24, %v394_v20  ;;  %v522_v35 = vmul.f32 %v426_v24, %v410_v23 }
  0x1e   : > { %v441_v5 = vld [vmem:[%s1142_s16] sm:$0xff]  ;;  %v457_v7 = vmul.f32 %v425_v4, %v393_v0  ;;  %v521_v10 = vmul.f32 %v425_v4, %v409_v1  ;;  %v379_v15 = vld [vmem:[%s1122_s17 + $0x10] sm:$0xff]  ;;  %v475_v17 = vmul.f32 %v443_v13, %v411_v11  ;;  %v507_v18 = vmul.f32 %v443_v13, %v395_v6  ;;  %v396_v31 = vld [vmem:[%s1127_s20 + $0x18] sm:$0xff] }
  0x1f   : > { %v473_v8 = vmul.f32 %v441_v5, %v409_v1  ;;  %v505_v9 = vmul.f32 %v441_v5, %v393_v0  ;;  %v474_v30 = vmul.f32 %v442_v25, %v410_v23  ;;  %v506_v34 = vmul.f32 %v442_v25, %v394_v20  ;;  %v412_v36 = vld [vmem:[%s1132_s28 + $0x18] sm:$0xff]  ;;  %v378_v41 = vld [vmem:[%s1122_s17 + $0x8] sm:$0xff]  ;;  %v397_v44 = vld [vmem:[%s1127_s20 + $0x20] sm:$0xff] }
  0x20   : > { %v491_v26 = vadd.f32 %v475_v17, %v459_v16  ;;  %v539_v27 = vsub.f32 %v507_v18, %v523_v19  ;;  %v428_v37 = vld [vmem:[%s1137_s12 + $0x18] sm:$0xff]  ;;  %v413_v49 = vld [vmem:[%s1132_s28 + $0x20] sm:$0xff]  ;;  %v398_v58 = vld [vmem:[%s1127_s20 + $0x28] sm:$0xff] }
  0x21   : > { %v489_v21 = vadd.f32 %v473_v8, %v457_v7  ;;  %v537_v22 = vsub.f32 %v505_v9, %v521_v10  ;;  %v444_v38 = vld [vmem:[%s1142_s16 + $0x18] sm:$0xff]  ;;  %v490_v42 = vadd.f32 %v474_v30, %v458_v29  ;;  %v460_v43 = vmul.f32 %v428_v37, %v396_v31  ;;  %v429_v50 = vld [vmem:[%s1137_s12 + $0x20] sm:$0xff]  ;;  %v414_v63 = vld [vmem:[%s1132_s28 + $0x28] sm:$0xff] }
  0x22   : > { %v555_v39 = vmul.f32 %v491_v26, %v363_v14  ;;  %v571_v40 = vmul.f32 %v539_v27, %v379_v15  ;;  %v538_v46 = vsub.f32 %v506_v34, %v522_v35  ;;  %v476_v47 = vmul.f32 %v444_v38, %v412_v36  ;;  %v445_v51 = vld [vmem:[%s1142_s16 + $0x20] sm:$0xff]  ;;  %v364_v54 = vld [vmem:[%s1117_s14 + $0x18] sm:$0xff]  ;;  %v430_v0 = vld [vmem:[%s1137_s12 + $0x28] sm:$0xff] }
  0x23   : > { %v553_v32 = vmul.f32 %v489_v21, %v361_v2  ;;  %v569_v33 = vmul.f32 %v537_v22, %v377_v3  ;;  %v508_v48 = vmul.f32 %v444_v38, %v396_v31  ;;  %v554_v53 = vmul.f32 %v490_v42, %v362_v28  ;;  %v380_v55 = vld [vmem:[%s1122_s17 + $0x18] sm:$0xff]  ;;  %v446_v1 = vld [vmem:[%s1142_s16 + $0x28] sm:$0xff]  ;;  %v365_v4 = vld [vmem:[%s1117_s14 + $0x20] sm:$0xff] }
  0x24   : > { %v587_v52 = vadd.f32 %v571_v40, %v555_v39  ;;  %v524_v56 = vmul.f32 %v428_v37, %v412_v36  ;;  %v461_v57 = vmul.f32 %v429_v50, %v397_v44  ;;  %v570_v60 = vmul.f32 %v538_v46, %v378_v41  ;;  %v381_v5 = vld [vmem:[%s1122_s17 + $0x20] sm:$0xff]  ;;  %v399_v8 = vld [vmem:[%s1127_s20 + $0x30] sm:$0xff]  ;;  %v400_v20 = vld [vmem:[%s1127_s20 + $0x38] sm:$0xff] }
  0x25   : > { %v585_v45 = vadd.f32 %v569_v33, %v553_v32  ;;  %v492_v61 = vadd.f32 %v476_v47, %v460_v43  ;;  %v477_v62 = vmul.f32 %v445_v51, %v413_v49  ;;  %v509_v6 = vmul.f32 %v445_v51, %v397_v44  ;;  %v415_v13 = vld [vmem:[%s1132_s28 + $0x30] sm:$0xff]  ;;  %v366_v23 = vld [vmem:[%s1117_s14 + $0x28] sm:$0xff]  ;;  %v432_v26 = vld [vmem:[%s1137_s12 + $0x38] sm:$0xff] }
  0x26   : > { %v608_v2 = vsel %vm601_vm0, %v587_v52, 0.0  ;;  %v540_v3 = vsub.f32 %v508_v48, %v524_v56  ;;  %v525_v7 = vmul.f32 %v429_v50, %v413_v49  ;;  %v586_v9 = vadd.f32 %v570_v60, %v554_v53  ;;  %v431_v14 = vld [vmem:[%s1137_s12 + $0x30] sm:$0xff]  ;;  %v382_v29 = vld [vmem:[%s1122_s17 + $0x28] sm:$0xff]  ;;  %v416_v32 = vld [vmem:[%s1132_s28 + $0x38] sm:$0xff] }
  0x27   : > { %v602_v59 = vsel %vm601_vm0, %v585_v45, 0.0  ;;  %609 = vadd.xlane.f32.xlu1 %v608_v2  ;;  %v556_v10 = vmul.f32 %v492_v61, %v364_v54  ;;  %v493_v11 = vadd.f32 %v477_v62, %v461_v57  ;;  %v462_v12 = vmul.f32 %v430_v0, %v398_v58  ;;  %v447_v15 = vld [vmem:[%s1142_s16 + $0x30] sm:$0xff]  ;;  %v448_v33 = vld [vmem:[%s1142_s16 + $0x38] sm:$0xff]  ;;  %v401_v39 = vld [vmem:[%s1127_s20 + $0x40] sm:$0xff] }
  0x28   : > { %603 = vadd.xlane.f32.xlu0 %v602_v59  ;;  %v572_v16 = vmul.f32 %v540_v3, %v380_v55  ;;  %v541_v17 = vsub.f32 %v509_v6, %v525_v7  ;;  %v478_v18 = vmul.f32 %v446_v1, %v414_v63  ;;  %v510_v19 = vmul.f32 %v446_v1, %v398_v58  ;;  %v367_v35 = vld [vmem:[%s1117_s14 + $0x30] sm:$0xff]  ;;  %v433_v40 = vld [vmem:[%s1137_s12 + $0x40] sm:$0xff]  ;;  %v402_v52 = vld [vmem:[%s1127_s20 + $0x48] sm:$0xff] }
  0x29   : > { %v605_v21 = vsel %vm601_vm0, %v586_v9, 0.0  ;;  %v557_v22 = vmul.f32 %v493_v11, %v365_v4  ;;  %v526_v24 = vmul.f32 %v430_v0, %v414_v63  ;;  %v463_v25 = vmul.f32 %v431_v14, %v399_v8  ;;  %v383_v44 = vld [vmem:[%s1122_s17 + $0x30] sm:$0xff]  ;;  %v417_v46 = vld [vmem:[%s1132_s28 + $0x40] sm:$0xff]  ;;  %v434_v53 = vld [vmem:[%s1137_s12 + $0x48] sm:$0xff] }
  0x2a   : > { %v588_v27 = vadd.f32 %v572_v16, %v556_v10  ;;  %v573_v28 = vmul.f32 %v541_v17, %v381_v5  ;;  %v494_v30 = vadd.f32 %v478_v18, %v462_v12  ;;  %v479_v31 = vmul.f32 %v447_v15, %v415_v13  ;;  %v449_v47 = vld [vmem:[%s1142_s16 + $0x40] sm:$0xff]  ;;  %v368_v56 = vld [vmem:[%s1117_s14 + $0x38] sm:$0xff]  ;;  %v418_v0 = vld [vmem:[%s1132_s28 + $0x48] sm:$0xff] }
  0x2b   : > { %v542_v34 = vsub.f32 %v510_v19, %v526_v24  ;;  %v511_v36 = vmul.f32 %v447_v15, %v399_v8  ;;  %v527_v37 = vmul.f32 %v431_v14, %v415_v13  ;;  %v464_v38 = vmul.f32 %v432_v26, %v400_v20  ;;  %v384_v61 = vld [vmem:[%s1122_s17 + $0x38] sm:$0xff]  ;;  %v450_v1 = vld [vmem:[%s1142_s16 + $0x48] sm:$0xff]  ;;  %v369_v3 = vld [vmem:[%s1117_s14 + $0x40] sm:$0xff] }
  0x2c   : > { %606 = vadd.xlane.f32.xlu0 %v605_v21  ;;  %v611_v41 = vsel %vm601_vm0, %v588_v27, 0.0  ;;  %v589_v42 = vadd.f32 %v573_v28, %v557_v22  ;;  %v558_v43 = vmul.f32 %v494_v30, %v366_v23  ;;  %v495_v45 = vadd.f32 %v479_v31, %v463_v25  ;;  %v403_v7 = vld [vmem:[%s1127_s20 + $0x50] sm:$0xff]  ;;  %v385_v12 = vld [vmem:[%s1122_s17 + $0x40] sm:$0xff]  ;;  %v436_v21 = vld [vmem:[%s1137_s12 + $0x58] sm:$0xff] }
  0x2d   : > { %612 = vadd.xlane.f32.xlu1 %v611_v41  ;;  %v574_v48 = vmul.f32 %v542_v34, %v382_v29  ;;  %v543_v49 = vsub.f32 %v511_v36, %v527_v37  ;;  %v480_v50 = vmul.f32 %v448_v33, %v416_v32  ;;  %v512_v51 = vmul.f32 %v448_v33, %v400_v20  ;;  %v435_v8 = vld [vmem:[%s1137_s12 + $0x50] sm:$0xff]  ;;  %v404_v20 = vld [vmem:[%s1127_s20 + $0x58] sm:$0xff]  ;;  %v370_v24 = vld [vmem:[%s1117_s14 + $0x48] sm:$0xff] }
  0x2e   : > { %v614_v54 = vsel %vm601_vm0, %v589_v42, 0.0  ;;  %v559_v55 = vmul.f32 %v495_v45, %v367_v35  ;;  %v528_v57 = vmul.f32 %v432_v26, %v416_v32  ;;  %v465_v58 = vmul.f32 %v433_v40, %v401_v39  ;;  %v419_v14 = vld [vmem:[%s1132_s28 + $0x50] sm:$0xff]  ;;  %v386_v29 = vld [vmem:[%s1122_s17 + $0x48] sm:$0xff]  ;;  %v420_v32 = vld [vmem:[%s1132_s28 + $0x58] sm:$0xff] }
  0x2f   : > { %v590_v59 = vadd.f32 %v574_v48, %v558_v43  ;;  %v575_v60 = vmul.f32 %v543_v49, %v383_v44  ;;  %v496_v62 = vadd.f32 %v480_v50, %v464_v38  ;;  %v481_v63 = vmul.f32 %v449_v47, %v417_v46  ;;  %v451_v15 = vld [vmem:[%s1142_s16 + $0x50] sm:$0xff]  ;;  %v452_v33 = vld [vmem:[%s1142_s16 + $0x58] sm:$0xff] }
  0x30   : > { %615 = vadd.xlane.f32.xlu0 %v614_v54  ;;  %v544_v2 = vsub.f32 %v512_v51, %v528_v57  ;;  %v513_v4 = vmul.f32 %v449_v47, %v401_v39  ;;  %v529_v5 = vmul.f32 %v433_v40, %v417_v46  ;;  %v466_v6 = vmul.f32 %v434_v53, %v402_v52  ;;  %v371_v35 = vld [vmem:[%s1117_s14 + $0x50] sm:$0xff]  ;;  %v405_v39 = vld [vmem:[%s1127_s20 + $0x60] sm:$0xff] }
  0x31   : > { %v617_v9 = vsel %vm601_vm0, %v590_v59, 0.0  ;;  %v591_v10 = vadd.f32 %v575_v60, %v559_v55  ;;  %v560_v11 = vmul.f32 %v496_v62, %v368_v56  ;;  %v497_v13 = vadd.f32 %v481_v63, %v465_v58  ;;  %v437_v40 = vld [vmem:[%s1137_s12 + $0x60] sm:$0xff]  ;;  %v387_v44 = vld [vmem:[%s1122_s17 + $0x50] sm:$0xff]  ;;  %v372_v56 = vld [vmem:[%s1117_s14 + $0x58] sm:$0xff] }
  0x32   : > { %618 = vadd.xlane.f32.xlu1 %v617_v9  ;;  %v576_v16 = vmul.f32 %v544_v2, %v384_v61  ;;  %v545_v17 = vsub.f32 %v513_v4, %v529_v5  ;;  %v482_v18 = vmul.f32 %v450_v1, %v418_v0  ;;  %v514_v19 = vmul.f32 %v450_v1, %v402_v52  ;;  %v421_v46 = vld [vmem:[%s1132_s28 + $0x60] sm:$0xff]  ;;  %v406_v52 = vld [vmem:[%s1127_s20 + $0x68] sm:$0xff]  ;;  %v388_v61 = vld [vmem:[%s1122_s17 + $0x58] sm:$0xff] }
  0x33   : > { %v620_v22 = vsel %vm601_vm0, %v591_v10, 0.0  ;;  %v561_v23 = vmul.f32 %v497_v13, %v369_v3  ;;  %v530_v25 = vmul.f32 %v434_v53, %v418_v0  ;;  %v467_v26 = vmul.f32 %v435_v8, %v403_v7  ;;  %v453_v47 = vld [vmem:[%s1142_s16 + $0x60] sm:$0xff]  ;;  %v438_v53 = vld [vmem:[%s1137_s12 + $0x68] sm:$0xff] }
  0x34   : > { %621 = vadd.xlane.f32.xlu0 %v620_v22  ;;  %v592_v27 = vadd.f32 %v576_v16, %v560_v11  ;;  %v577_v28 = vmul.f32 %v545_v17, %v385_v12  ;;  %v498_v30 = vadd.f32 %v482_v18, %v466_v6  ;;  %v483_v31 = vmul.f32 %v451_v15, %v419_v14  ;;  %v422_v0 = vld [vmem:[%s1132_s28 + $0x68] sm:$0xff]  ;;  %v373_v3 = vld [vmem:[%s1117_s14 + $0x60] sm:$0xff] }
  0x35   : > { %v546_v34 = vsub.f32 %v514_v19, %v530_v25  ;;  %v515_v36 = vmul.f32 %v451_v15, %v403_v7  ;;  %v531_v37 = vmul.f32 %v435_v8, %v419_v14  ;;  %v468_v38 = vmul.f32 %v436_v21, %v404_v20  ;;  %v454_v1 = vld [vmem:[%s1142_s16 + $0x68] sm:$0xff]  ;;  %v407_v7 = vld [vmem:[%s1127_s20 + $0x70] sm:$0xff]  ;;  %v389_v12 = vld [vmem:[%s1122_s17 + $0x60] sm:$0xff] }
  0x36   : > { %v623_v41 = vsel %vm601_vm0, %v592_v27, 0.0  ;;  %v593_v42 = vadd.f32 %v577_v28, %v561_v23  ;;  %v562_v43 = vmul.f32 %v498_v30, %v370_v24  ;;  %v499_v45 = vadd.f32 %v483_v31, %v467_v26  ;;  %v439_v8 = vld [vmem:[%s1137_s12 + $0x70] sm:$0xff]  ;;  %v374_v24 = vld [vmem:[%s1117_s14 + $0x68] sm:$0xff] }
  0x37   : > { %624 = vadd.xlane.f32.xlu1 %v623_v41  ;;  %v578_v48 = vmul.f32 %v546_v34, %v386_v29  ;;  %v547_v49 = vsub.f32 %v515_v36, %v531_v37  ;;  %v484_v50 = vmul.f32 %v452_v33, %v420_v32  ;;  %v516_v51 = vmul.f32 %v452_v33, %v404_v20  ;;  %v423_v14 = vld [vmem:[%s1132_s28 + $0x70] sm:$0xff]  ;;  %v408_v20 = vld [vmem:[%s1127_s20 + $0x78] sm:$0xff]  ;;  %v390_v29 = vld [vmem:[%s1122_s17 + $0x68] sm:$0xff]  ;;  %s1297_s20 = scalar_lea.hbm %s1345_s6, %s1110_s9 }
  0x38   : > { %v626_v54 = vsel %vm601_vm0, %v593_v42, 0.0  ;;  %v563_v55 = vmul.f32 %v499_v45, %v371_v35  ;;  %v532_v57 = vmul.f32 %v436_v21, %v420_v32  ;;  %v469_v58 = vmul.f32 %v437_v40, %v405_v39  ;;  %v455_v15 = vld [vmem:[%s1142_s16 + $0x70] sm:$0xff]  ;;  %v440_v21 = vld [vmem:[%s1137_s12 + $0x78] sm:$0xff] }
  0x39   : > { %627 = vadd.xlane.f32.xlu0 %v626_v54  ;;  %v594_v59 = vadd.f32 %v578_v48, %v562_v43  ;;  %v579_v60 = vmul.f32 %v547_v49, %v387_v44  ;;  %v500_v62 = vadd.f32 %v484_v50, %v468_v38  ;;  %v485_v63 = vmul.f32 %v453_v47, %v421_v46  ;;  %v424_v32 = vld [vmem:[%s1132_s28 + $0x78] sm:$0xff]  ;;  %v375_v35 = vld [vmem:[%s1117_s14 + $0x70] sm:$0xff]  ;;  %s1029_s28 = smov [#allocation2]  }
  0x3a   : > { %v548_v2 = vsub.f32 %v516_v51, %v532_v57  ;;  %v517_v4 = vmul.f32 %v453_v47, %v405_v39  ;;  %v533_v5 = vmul.f32 %v437_v40, %v421_v46  ;;  %v470_v6 = vmul.f32 %v438_v53, %v406_v52  ;;  %v456_v33 = vld [vmem:[%s1142_s16 + $0x78] sm:$0xff]  ;;  %v391_v42 = vld [vmem:[%s1122_s17 + $0x70] sm:$0xff]  ;;  %s969_s29 = sshll.u32 %s1029_s28, 4  ;;  %s970_s29 = int_to_ptr.vmem [resolvable:$false] %s969_s29 }
  0x3b   : > { %v629_v9 = vsel %vm601_vm0, %v594_v59, 0.0  ;;  %v595_v10 = vadd.f32 %v579_v60, %v563_v55  ;;  %v564_v11 = vmul.f32 %v500_v62, %v372_v56  ;;  %v501_v13 = vadd.f32 %v485_v63, %v469_v58  ;;  %v376_v50 = vld [vmem:[%s1117_s14 + $0x78] sm:$0xff]  ;;  %s324_s14 = scalar_lea.vmem [#allocation2], %s323_s11  ;;  %s971_s10 = scalar_lea.vmem %s970_s29, 32 }
  0x3c   : > { %630 = vadd.xlane.f32.xlu1 %v629_v9  ;;  %v580_v16 = vmul.f32 %v548_v2, %v388_v61  ;;  %v549_v17 = vsub.f32 %v517_v4, %v533_v5  ;;  %v486_v18 = vmul.f32 %v454_v1, %v422_v0  ;;  %v518_v19 = vmul.f32 %v454_v1, %v406_v52  ;;  %v392_v54 = vld [vmem:[%s1122_s17 + $0x78] sm:$0xff]  ;;  %s792_s17 = sshll.u32 %s324_s14, 4  ;;  %s1299_s17 = int_to_ptr.vmem [resolvable:$true] %s792_s17 }
  0x3d   : > { %v632_v22 = vsel %vm601_vm0, %v595_v10, 0.0  ;;  %v565_v23 = vmul.f32 %v501_v13, %v373_v3  ;;  %v534_v25 = vmul.f32 %v438_v53, %v422_v0  ;;  %v471_v26 = vmul.f32 %v439_v8, %v407_v7  ;;  %s965_s26 = scalar_lea.vmem %s1299_s17, 16  ;;  %p972_p0 = scmp.lt.s32.totalorder %s1299_s17, %s970_s29 }
  0x3e   : > { %633 = vadd.xlane.f32.xlu0 %v632_v22  ;;  %v596_v27 = vadd.f32 %v580_v16, %v564_v11  ;;  %v581_v28 = vmul.f32 %v549_v17, %v389_v12  ;;  %v502_v30 = vadd.f32 %v486_v18, %v470_v6  ;;  %v487_v31 = vmul.f32 %v455_v15, %v423_v14  ;;  %p966_p11 = scmp.ne.s32.totalorder %s1299_s17, %s965_s26  ;;  %p973_p1 = scmp.lt.s32.totalorder %s971_s10, %s965_s26 }
  0x3f   : > { %v550_v34 = vsub.f32 %v518_v19, %v534_v25  ;;  %v519_v36 = vmul.f32 %v455_v15, %v407_v7  ;;  %v535_v37 = vmul.f32 %v439_v8, %v423_v14  ;;  %v472_v38 = vmul.f32 %v440_v21, %v408_v20 }
  0x40   : > { %v635_v39 = vsel %vm601_vm0, %v596_v27, 0.0  ;;  %v597_v40 = vadd.f32 %v581_v28, %v565_v23  ;;  %v566_v41 = vmul.f32 %v502_v30, %v374_v24  ;;  %v503_v43 = vadd.f32 %v487_v31, %v471_v26  ;;  %p967_p12 = pnand %p966_p11, %p1100_p5  ;;  %p974_p2 = por %p973_p1, %p972_p0 }
  0x41   : > { %636 = vadd.xlane.f32.xlu1 %v635_v39  ;;  %v582_v44 = vmul.f32 %v550_v34, %v390_v29  ;;  %v551_v45 = vsub.f32 %v519_v36, %v535_v37  ;;  %v488_v46 = vmul.f32 %v456_v33, %v424_v32  ;;  %v520_v47 = vmul.f32 %v456_v33, %v408_v20 }
  0x42   : > { %v638_v48 = vsel %vm601_vm0, %v597_v40, 0.0  ;;  %v567_v49 = vmul.f32 %v503_v43, %v375_v35  ;;  %v536_v51 = vmul.f32 %v440_v21, %v424_v32  ;;  %v666_v0 = vlaneseq  ;;  %p968_p13 = pneg %p967_p12 }
  0x43   : > { %639 = vadd.xlane.f32.xlu0 %v638_v48  ;;  %v598_v52 = vadd.f32 %v582_v44, %v566_v41  ;;  %v583_v53 = vmul.f32 %v551_v45, %v391_v42  ;;  %v504_v55 = vadd.f32 %v488_v46, %v472_v38 }
  0x44   : > { %v552_v56 = vsub.f32 %v520_v47, %v536_v51  ;;  %v1256_v1 = vand.u32 127, %v666_v0  ;;  %v1259_v3 = vshrl.u32 %v666_v0, 7  ;;  %p975_p3 = pnand %p974_p2, %p968_p13 }
  0x45   : > { %v641_v57 = vsel %vm601_vm0, %v598_v52, 0.0  ;;  %v599_v58 = vadd.f32 %v583_v53, %v567_v49  ;;  %v568_v59 = vmul.f32 %v504_v55, %v376_v50 }
  0x46   : > { %642 = vadd.xlane.f32.xlu1 %v641_v57  ;;  %v584_v60 = vmul.f32 %v552_v56, %v392_v54  ;;  %v672_v2 = vadd.s32 4294967288, %v1256_v1  ;;  %v679_v5 = vadd.s32 4294967280, %v1256_v1  ;;  %v670_v8 = vsub.s32 %v1256_v1, %v1259_v3 }
  0x47   : > { %v644_v61 = vsel %vm601_vm0, %v599_v58, 0.0  ;;  %v686_v9 = vadd.s32 4294967272, %v1256_v1  ;;  %v693_v13 = vadd.s32 4294967264, %v1256_v1  ;;  %v700_v18 = vadd.s32 4294967256, %v1256_v1 }
  0x48   : > { %645 = vadd.xlane.f32.xlu0 %v644_v61  ;;  %v600_v62 = vadd.f32 %v584_v60, %v568_v59  ;;  %v675_v7 = vsub.s32 %v672_v2, %v1259_v3  ;;  %v682_v11 = vsub.s32 %v679_v5, %v1259_v3  ;;  %v707_v22 = vadd.s32 4294967248, %v1256_v1 }
  0x49   : > { %v689_v15 = vsub.s32 %v686_v9, %v1259_v3  ;;  %v696_v20 = vsub.s32 %v693_v13, %v1259_v3  ;;  %v703_v25 = vsub.s32 %v700_v18, %v1259_v3  ;;  %v714_v27 = vadd.s32 4294967240, %v1256_v1 }
  0x4a   : > { %v647_v63 = vsel %vm601_vm0, %v600_v62, 0.0  ;;  %v710_v29 = vsub.s32 %v707_v22, %v1259_v3  ;;  %v721_v30 = vadd.s32 4294967232, %v1256_v1  ;;  %v728_v35 = vadd.s32 4294967224, %v1256_v1 }
  0x4b   : > { %648 = vadd.xlane.f32.xlu1 %v647_v63  ;;  %v717_v34 = vsub.s32 %v714_v27, %v1259_v3  ;;  %v735_v40 = vadd.s32 4294967216, %v1256_v1  ;;  %v742_v45 = vadd.s32 4294967208, %v1256_v1  ;;  %v749_v50 = vadd.s32 4294967200, %v1256_v1 }
  0x4c   : > { %v724_v39 = vsub.s32 %v721_v30, %v1259_v3  ;;  %v731_v44 = vsub.s32 %v728_v35, %v1259_v3  ;;  %v756_v57 = vadd.s32 4294967192, %v1256_v1  ;;  %v763_v60 = vadd.s32 4294967184, %v1256_v1 }
  0x4d   : > { %v738_v48 = vsub.s32 %v735_v40, %v1259_v3  ;;  %v745_v54 = vsub.s32 %v742_v45, %v1259_v3  ;;  %v752_v58 = vsub.s32 %v749_v50, %v1259_v3  ;;  %v770_v5 = vadd.s32 4294967176, %v1256_v1 }
  0x4e   : > { %v759_v2 = vsub.s32 %v756_v57, %v1259_v3 }
  0xb4   : > { %v610_v6 = vpop.xlane.xlu1 %609 }
  0xb5   : > { %v604_v4 = vpop.xlane.xlu0 %603  ;;  %v683_v19 = vrot.slane %v610_v6, %v682_v11  ;;  %v766_v6 = vsub.s32 %v763_v60, %v1259_v3 }
  0xb6   : > { %v671_v14 = vrot.slane %v604_v4, %v670_v8 }
  0xb9   : > { %v607_v10 = vpop.xlane.xlu0 %606 }
  0xba   : > { %v676_v12 = vrot.slane %v607_v10, %v675_v7  ;;  %v613_v16 = vpop.xlane.xlu1 %612 }
  0xbb   : > { %v690_v23 = vrot.slane %v613_v16, %v689_v15 }
  0xbc   : > { %v678_v17 = vsel %vm677_vm1, %v676_v12, %v671_v14  ;;  %v773_v12 = vsub.s32 %v770_v5, %v1259_v3 }
  0xbd   : > { %v616_v21 = vpop.xlane.xlu0 %615  ;;  %v685_v24 = vsel %vm684_vm2, %v683_v19, %v678_v17 }
  0xbe   : > { %v697_v28 = vrot.slane %v616_v21, %v696_v20  ;;  %v692_v31 = vsel %vm691_vm3, %v690_v23, %v685_v24 }
  0xbf   : > { %v619_v26 = vpop.xlane.xlu1 %618 }
  0xc0   : > { %v704_v33 = vrot.slane %v619_v26, %v703_v25  ;;  %v699_v36 = vsel %vm698_vm4, %v697_v28, %v692_v31 }
  0xc1   : > { %v622_v32 = vpop.xlane.xlu0 %621 }
  0xc2   : > { %v711_v37 = vrot.slane %v622_v32, %v710_v29  ;;  %v706_v42 = vsel %vm705_vm5, %v704_v33, %v699_v36 }
  0xc4   : > { %v625_v38 = vpop.xlane.xlu1 %624  ;;  %v713_v46 = vsel %vm712_vm6, %v711_v37, %v706_v42 }
  0xc5   : > { %v718_v43 = vrot.slane %v625_v38, %v717_v34 }
  0xc6   : > { %v628_v41 = vpop.xlane.xlu0 %627 }
  0xc7   : > { %v725_v47 = vrot.slane %v628_v41, %v724_v39  ;;  %v720_v51 = vsel %vm719_vm7, %v718_v43, %v713_v46 }
  0xc9   : > { %v631_v49 = vpop.xlane.xlu1 %630  ;;  %v727_v55 = vsel %vm726_vm8, %v725_v47, %v720_v51 }
  0xca   : > { %v732_v52 = vrot.slane %v631_v49, %v731_v44 }
  0xcb   : > { %v634_v53 = vpop.xlane.xlu0 %633 }
  0xcc   : > { %v739_v56 = vrot.slane %v634_v53, %v738_v48  ;;  %v734_v61 = vsel %vm733_vm9, %v732_v52, %v727_v55 }
  0xce   : > { %v637_v59 = vpop.xlane.xlu1 %636  ;;  %v741_v63 = vsel %vm740_vm10, %v739_v56, %v734_v61 }
  0xcf   : > { %v746_v62 = vrot.slane %v637_v59, %v745_v54 }
  0xd0   : > { %v640_v0 = vpop.xlane.xlu0 %639 }
  0xd1   : > { %v753_v4 = vrot.slane %v640_v0, %v752_v58  ;;  %v748_v7 = vsel %vm747_vm11, %v746_v62, %v741_v63 }
  0xd3   : > { %v643_v8 = vpop.xlane.xlu1 %642  ;;  %v755_v9 = vsel %vm754_vm12, %v753_v4, %v748_v7 }
  0xd4   : > { %v760_v10 = vrot.slane %v643_v8, %v759_v2 }
  0xd5   : > { %v646_v11 = vpop.xlane.xlu0 %645 }
  0xd6   : > { %v767_v13 = vrot.slane %v646_v11, %v766_v6  ;;  %v762_v14 = vsel %vm761_vm13, %v760_v10, %v755_v9 }
  0xd8   : > { %v769_v15 = vsel %vm768_vm14, %v767_v13, %v762_v14  ;;  %v649_v1 = vpop.xlane.xlu1 %648 }
  0xd9   : > { %v774_v16 = vrot.slane %v649_v1, %v773_v12 }
  0xdb   : > { %v776_v3 = vsel %vm775_vm15, %v774_v16, %v769_v15 }
  0xdc   : > { %778 = vst [vmem:[%s324_s14] sm:$0x1] %v776_v3 }
  0xdd   : > { %978 = shalt.err (!%p975_p3)
}
  0xde   : > { %s979_s9 = scalar_lea.hbm %s1297_s20, 16  ;;  %s983_s15 = scalar_lea.hbm %s1345_s6, 48 }
  0xdf   : > { %p980_p4 = scmp.ne.s32.totalorder %s1297_s20, %s979_s9  ;;  %p984_p9 = scmp.lt.u32.totalorder %s1297_s20, %s1345_s6 }
  0xe0   : > { %p985_p10 = scmp.lt.u32.totalorder %s983_s15, %s979_s9  ;;  %p987_p12 = scmp.lt.u32.totalorder %s979_s9, %s1297_s20 }
  0xe1   : > { %p981_p7 = pnand %p980_p4, %p1100_p5 }
  0xe2   : > { %p986_p11 = por %p985_p10, %p984_p9 }
  0xe3   : > { %p982_p8 = pneg %p981_p7 }
  0xe4   : > { %p988_p13 = por %p987_p12, %p986_p11 }
  0xe6   : > { %p989_p0 = pnand %p988_p13, %p982_p8 }
  0xe8   : > { %992 = shalt.err (!%p989_p0)
}
  0xe9   : > { %926 = dma.vmem_to_hbm [thread:$0]  (%p1100_p5), %s1299_s17, 16, %s1297_s20, %s780_s25  }
  0xea PF: > { %p932_p1 = scmp.ge.s32.totalorder %s1027_s24, 2  ;;  %s804_s14 = sand.u32 1, %s1015_s21  }
  0xeb   : > { %s805_s18 = scalar_lea.sflag [#allocation3], %s804_s14 }
  0xec   : > { %p929_p2 = pnand %p932_p1, %p1104_p6 }
  0xee   : > { %1010 = dma.done.wait (!%p929_p2), %s805_s18, 16  }
  0xef   : > { %1012 = vsyncadd (!%p929_p2), %s805_s18, 4294967280  ;;  %p16_p3 = scmp.ge.s32.totalorder %s1088_s27, 5   ;;  %s1348_s21 = smov %s1019_s22 }
  0xf0   : > { %s1349_s22 = smov %s1023_s23  ;;  %s1350_s23 = smov %s1098_s30 }
  0xf1   : > { %s1351_s24 = smov %s1088_s27  ;;  %18 = sbr.rel (!%p16_p3) target bundleno = 3 (0x3), region = 94 }
  0xf8   :  { %809 = vsyncpa [#allocation3], 1 }
  0xf9   :  { %811 = vsyncpa [#allocation3 + $0x1], 1 }

</bundles_post_ra>
